<compile_context>
chip_gen: v6e
topology: v6e:2x2x1
jax: 0.10.0
libtpu: 0.0.40
codegen_flags: <defaults>
</compile_context>

<pallas_src>
import functools

import jax
import jax.numpy as jnp
from jax.experimental import pallas as pl
from jax.experimental.pallas import tpu as pltpu


def fm_kernel(x_ref, w_ref, s_ref, b_ref, v_ref, o_ref):
    x = x_ref[...]          # (TB, Fp) f32, current batch tile
    w = w_ref[...]          # (1, Fp)  f32, linear weights (padded)
    s = s_ref[...]          # (1, Fp)  f32, per-feature sum_k(V^2) (padded)
    v = v_ref[...]          # (Fp, Kp) f32, factor matrix (padded)
    bias = b_ref[0, 0]      # scalar from SMEM

    x2 = x * x

    # linear part: row-sum(x * w) + b   (VPU multiply + XLU lane reduce, no MXU)
    linear = jnp.sum(x * w, axis=-1, keepdims=True) + bias        # (TB, 1)

    # sum_k((x^2) @ (V^2)) == row-sum((x^2) * sum_k(V^2))          (pure VPU/XLU)
    sum_ip2 = jnp.sum(x2 * s, axis=-1, keepdims=True)             # (TB, 1)

    # single MXU matmul; padded K columns of V are zero so they add nothing
    xv = jnp.dot(x, v, preferred_element_type=jnp.float32)        # (TB, Kp)
    sum_ip1 = jnp.sum(xv * xv, axis=-1, keepdims=True)            # (TB, 1)

    # matches the PyTorch module's sign: 0.5 * sum(ip2 - ip1)
    o_ref[...] = linear + 0.5 * (sum_ip2 - sum_ip1)


def _round_up(n, m):
    return ((n + m - 1) // m) * m


@functools.partial(jax.jit, static_argnames=("tb",))
def fm_layer(x, w, b, v, *, tb=2048):
    """x: (B, F), w: (1, F), b: (1,), v: (F, K) -> (B,)"""
    B, F = x.shape
    K = v.shape[1]

    Fp = _round_up(F, 128)                 # lane-dense feature axis
    Kp = _round_up(K, 128)                 # lane-dense latent axis for x @ V
    TB = min(tb, _round_up(B, 8))          # batch tile (>=8, <= tb)
    Bp = _round_up(B, TB)

    f32 = jnp.float32
    x_pad = jnp.zeros((Bp, Fp), f32).at[:B, :F].set(x.astype(f32))
    w_pad = jnp.zeros((1, Fp), f32).at[:, :F].set(w.astype(f32))
    v_pad = jnp.zeros((Fp, Kp), f32).at[:F, :K].set(v.astype(f32))
    # per-feature sum_k(V^2); padded features are zero so they contribute nothing
    s_pad = jnp.sum(v_pad * v_pad, axis=1).reshape(1, Fp)
    b2 = b.reshape(1, 1).astype(f32)

    grid = (Bp // TB,)

    out = pl.pallas_call(
        fm_kernel,
        out_shape=jax.ShapeDtypeStruct((Bp, 1), f32),
        grid=grid,
        in_specs=[
            # x: tiled over the batch axis, double-buffered by the pipeline
            pl.BlockSpec((TB, Fp), lambda i: (i, 0)),
            # parameters: constant index_map -> single DMA, stays resident
            pl.BlockSpec((1, Fp), lambda i: (0, 0)),
            pl.BlockSpec((1, Fp), lambda i: (0, 0)),
            pl.BlockSpec((1, 1), lambda i: (0, 0),
                         memory_space=pltpu.MemorySpace.SMEM),
            pl.BlockSpec((Fp, Kp), lambda i: (0, 0)),
        ],
        out_specs=pl.BlockSpec((TB, 1), lambda i: (i, 0)),
        compiler_params=pltpu.CompilerParams(
            dimension_semantics=("parallel",)),
    )(x_pad, w_pad, s_pad, b2, v_pad)

    return out[:B, 0]


def fm_reference(x, w, b, v):
    linear_part = x @ w.T + b.reshape(1, 1)
    ip1 = (x @ v) ** 2
    ip2 = (x ** 2) @ (v ** 2)
    part = jnp.sum(ip2 - ip1, axis=1)
    return linear_part.reshape(-1) + 0.5 * part


if __name__ == "__main__":
    feature_nums = 10
    k = 5
    batch = 8

    key = jax.random.PRNGKey(0)
    kx, kw, kb, kv = jax.random.split(key, 4)

    # deterministic parameter init (mirroring shapes from FM_Layer.__init__)
    x = jax.random.normal(kx, (batch, feature_nums), dtype=jnp.float32)
    # nn.Linear(feature_nums, 1): weight (1, F), bias (1,), uniform(-1/sqrt(F), 1/sqrt(F))
    bound = 1.0 / jnp.sqrt(jnp.float32(feature_nums))
    w = jax.random.uniform(kw, (1, feature_nums), minval=-bound, maxval=bound,
                           dtype=jnp.float32)
    b = jax.random.uniform(kb, (1,), minval=-bound, maxval=bound, dtype=jnp.float32)
    # V ~ uniform(-0.1, 0.1), shape (F, K)
    v = jax.random.uniform(kv, (feature_nums, k), minval=-0.1, maxval=0.1,
                           dtype=jnp.float32)

    out = jax.block_until_ready(fm_layer(x, w, b, v))
    ref = jax.block_until_ready(fm_reference(x, w, b, v))

    assert out.shape == (batch,), out.shape
    assert jnp.allclose(out, ref, atol=1e-5, rtol=1e-5), (out, ref)
    print("KERNEL_OK")
</pallas_src>

<mosaic_0001>
module attributes {stable_mosaic.version = 11 : i64} {
  func.func @fm_kernel(%arg0: i32, %arg1: memref<8x128xf32, #tpu.memory_space<vmem>>, %arg2: memref<1x128xf32, #tpu.memory_space<vmem>>, %arg3: memref<1x128xf32, #tpu.memory_space<vmem>>, %arg4: memref<1x1xf32, #tpu.memory_space<smem>>, %arg5: memref<128x128xf32, #tpu.memory_space<vmem>>, %arg6: memref<8x1xf32, #tpu.memory_space<vmem>>) attributes {dimension_semantics = [#tpu.dimension_semantics<parallel>], iteration_bounds = array<i64: 1>, scalar_prefetch = 0 : i64, scratch_operands = 0 : i64, tpu.core_type = #tpu.core_type<tc>, window_params = [{transform_indices = @transform_0, window_bounds = array<i64: 8, 128>}, {pipeline_mode = #tpu.pipeline_mode<synchronous>, transform_indices = @transform_1, window_bounds = array<i64: 1, 128>}, {pipeline_mode = #tpu.pipeline_mode<synchronous>, transform_indices = @transform_2, window_bounds = array<i64: 1, 128>}, {transform_indices = @transform_3, window_bounds = array<i64: 1, 1>}, {pipeline_mode = #tpu.pipeline_mode<synchronous>, transform_indices = @transform_4, window_bounds = array<i64: 128, 128>}, {transform_indices = @transform_5, window_bounds = array<i64: 8, 1>}]} {
    %c0 = arith.constant 0 : index
    %c0_0 = arith.constant 0 : index
    %0 = vector.load %arg1[%c0, %c0_0] : memref<8x128xf32, #tpu.memory_space<vmem>>, vector<8x128xf32>
    %c0_1 = arith.constant 0 : index
    %c0_2 = arith.constant 0 : index
    %1 = vector.load %arg2[%c0_1, %c0_2] : memref<1x128xf32, #tpu.memory_space<vmem>>, vector<1x128xf32>
    %c0_3 = arith.constant 0 : index
    %c0_4 = arith.constant 0 : index
    %2 = vector.load %arg3[%c0_3, %c0_4] : memref<1x128xf32, #tpu.memory_space<vmem>>, vector<1x128xf32>
    %c0_5 = arith.constant 0 : index
    %c0_6 = arith.constant 0 : index
    %3 = vector.load %arg5[%c0_5, %c0_6] : memref<128x128xf32, #tpu.memory_space<vmem>>, vector<128x128xf32>
    %c0_7 = arith.constant 0 : index
    %c0_8 = arith.constant 0 : index
    %4 = memref.load %arg4[%c0_7, %c0_8] : memref<1x1xf32, #tpu.memory_space<smem>>
    %5 = arith.mulf %0, %0 : vector<8x128xf32>
    %6 = vector.broadcast %1 : vector<1x128xf32> to vector<8x128xf32>
    %7 = arith.mulf %0, %6 : vector<8x128xf32>
    %cst = arith.constant dense<0.000000e+00> : vector<8xf32>
    %8 = vector.multi_reduction <add>, %7, %cst [1] : vector<8x128xf32> to vector<8xf32>
    %9 = vector.shape_cast %8 : vector<8xf32> to vector<8x1xf32>
    %10 = vector.broadcast %4 : f32 to vector<8x1xf32>
    %11 = arith.addf %9, %10 : vector<8x1xf32>
    %12 = vector.broadcast %2 : vector<1x128xf32> to vector<8x128xf32>
    %13 = arith.mulf %5, %12 : vector<8x128xf32>
    %cst_9 = arith.constant dense<0.000000e+00> : vector<8xf32>
    %14 = vector.multi_reduction <add>, %13, %cst_9 [1] : vector<8x128xf32> to vector<8xf32>
    %15 = vector.shape_cast %14 : vector<8xf32> to vector<8x1xf32>
    %cst_10 = arith.constant dense<0.000000e+00> : vector<8x128xf32>
    %16 = tpu.matmul %0, %3, %cst_10 {dimension_numbers = #tpu.dot_dimension_numbers<[1], [0], [0], [1], [0, 0, 1, 1], [], []>} : vector<8x128xf32>, vector<128x128xf32>, vector<8x128xf32> -> vector<8x128xf32>
    %17 = arith.mulf %16, %16 : vector<8x128xf32>
    %cst_11 = arith.constant dense<0.000000e+00> : vector<8xf32>
    %18 = vector.multi_reduction <add>, %17, %cst_11 [1] : vector<8x128xf32> to vector<8xf32>
    %19 = vector.shape_cast %18 : vector<8xf32> to vector<8x1xf32>
    %20 = arith.subf %15, %19 : vector<8x1xf32>
    %cst_12 = arith.constant 5.000000e-01 : f32
    %21 = vector.broadcast %cst_12 : f32 to vector<8x1xf32>
    %22 = arith.mulf %21, %20 : vector<8x1xf32>
    %23 = arith.addf %11, %22 : vector<8x1xf32>
    %c0_13 = arith.constant 0 : index
    %c0_14 = arith.constant 0 : index
    %24 = vector.load %arg6[%c0_13, %c0_14] : memref<8x1xf32, #tpu.memory_space<vmem>>, vector<8x1xf32>
    tpu.vector_store %arg6[%c0_13, %c0_14], %23 {strides = array<i32>} : memref<8x1xf32, #tpu.memory_space<vmem>>, vector<8x1xf32>,
    return
  }
  func.func @transform_0(%arg0: i32) -> (i32, i32) {
    %c0_i32 = arith.constant 0 : i32
    %c0_i32_0 = arith.constant 0 : i32
    return %arg0, %c0_i32 : i32, i32
  }
  func.func @transform_1(%arg0: i32) -> (i32, i32) {
    %c0_i32 = arith.constant 0 : i32
    %c0_i32_0 = arith.constant 0 : i32
    %c0_i32_1 = arith.constant 0 : i32
    return %c0_i32, %c0_i32_0 : i32, i32
  }
  func.func @transform_2(%arg0: i32) -> (i32, i32) {
    %c0_i32 = arith.constant 0 : i32
    %c0_i32_0 = arith.constant 0 : i32
    %c0_i32_1 = arith.constant 0 : i32
    return %c0_i32, %c0_i32_0 : i32, i32
  }
  func.func @transform_3(%arg0: i32) -> (i32, i32) {
    %c0_i32 = arith.constant 0 : i32
    %c0_i32_0 = arith.constant 0 : i32
    %c0_i32_1 = arith.constant 0 : i32
    return %c0_i32, %c0_i32_0 : i32, i32
  }
  func.func @transform_4(%arg0: i32) -> (i32, i32) {
    %c0_i32 = arith.constant 0 : i32
    %c0_i32_0 = arith.constant 0 : i32
    %c0_i32_1 = arith.constant 0 : i32
    return %c0_i32, %c0_i32_0 : i32, i32
  }
  func.func @transform_5(%arg0: i32) -> (i32, i32) {
    %c0_i32 = arith.constant 0 : i32
    %c0_i32_0 = arith.constant 0 : i32
    return %arg0, %c0_i32 : i32, i32
  }
}

</mosaic_0001>

<bundles_post_ra>
// kernel: fm_layer.1
= control target key start
LH: loop header
LB: loop body
LE: loop exit
PB: predicated region body
PF: predicated region fallthrough
CT: control target
= control target key end

     0   :  { %v200_v0 = vmov 0.0   ;;  %vm201_vm0 = vmmov 0   ;;  %vm138_vm1 = vcmask 7168   ;;  %s295_s4 = inlined_call_operand.vmem [shape: f32[128,128], index: 4, kind: input, shape index: {}]   ;;  %s296_s0 = inlined_call_operand.vmem [shape: f32[8,128], index: 0, kind: input, shape index: {}]   ;;  %s297_s2 = inlined_call_operand.vmem [shape: f32[1,128], index: 2, kind: input, shape index: {}]   ;;  %s298_s1 = inlined_call_operand.vmem [shape: f32[1,128], index: 1, kind: input, shape index: {}]   ;;  %s299_s3 = inlined_call_operand.<no memory space> [shape: f32[1,1], index: 3, kind: input, shape index: {}]   ;;  %s300_s5 = inlined_call_operand.vmem [shape: f32[8,1], index: 5, kind: output, shape index: {}]  }
   0x1   :  { %163 = vmatprep.subr.mxu0 %v200_v0  ;;  %v39_v1 = vld [vmem:[%s295_s4 + $0x78] sm:$0xff]  ;;  %v38_v2 = vld [vmem:[%s295_s4 + $0x70] sm:$0xff]  ;;  %195 = vmatprep.mubr.msk.f32.mxu0 %vm201_vm0, %v200_v0  ;;  %v37_v3 = vld [vmem:[%s295_s4 + $0x68] sm:$0xff]  ;;  %v51_v27 = vstv %s299_s3 }
   0x2   :  { %164 = vmatpush3.msra.mxu0 %v39_v1  ;;  %v36_v4 = vld [vmem:[%s295_s4 + $0x60] sm:$0xff]  ;;  %v35_v7 = vld [vmem:[%s295_s4 + $0x58] sm:$0xff]  ;;  %v34_v9 = vld [vmem:[%s295_s4 + $0x50] sm:$0xff] }
   0x3   :  { %165 = vmatprep.subr.mxu0 %v200_v0  ;;  %v21_v5 = vld [vmem:[%s296_s0] sm:$0xff]  ;;  %v33_v11 = vld [vmem:[%s295_s4 + $0x48] sm:$0xff]  ;;  %v31_v13 = vld [vmem:[%s295_s4 + $0x38] sm:$0xff] }
   0x4   :  { %166 = vmatpush3.msra.mxu0 %v38_v2  ;;  %v145_v6 = vld [vmem:[%s297_s2] ss:$0 sm:$0xff]  ;;  %v41_v8 = vmul.f32 %v21_v5, %v21_v5  ;;  %v30_v14 = vld [vmem:[%s295_s4 + $0x30] sm:$0xff]  ;;  %v29_v15 = vld [vmem:[%s295_s4 + $0x28] sm:$0xff] }
   0x5   :  { %167 = vmatprep.subr.mxu0 %v200_v0  ;;  %v32_v12 = vld [vmem:[%s295_s4 + $0x40] sm:$0xff]  ;;  %v27_v17 = vld [vmem:[%s295_s4 + $0x18] sm:$0xff]  ;;  %v26_v18 = vld [vmem:[%s295_s4 + $0x10] sm:$0xff] }
   0x6   :  { %168 = vmatpush3.msra.mxu0 %v37_v3  ;;  %v59_v10 = vmul.f32 %v145_v6, %v41_v8  ;;  %v28_v16 = vld [vmem:[%s295_s4 + $0x20] sm:$0xff]  ;;  %v25_v19 = vld [vmem:[%s295_s4 + $0x8] sm:$0xff] }
   0x7   :  { %169 = vmatprep.subr.mxu0 %v200_v0  ;;  %v24_v20 = vld [vmem:[%s295_s4] sm:$0xff] }
   0x8   :  { %170 = vmatpush3.msra.mxu0 %v36_v4  ;;  %60 = vadd.xlane.f32.xlu0 %v59_v10  ;;  %v144_v21 = vld [vmem:[%s298_s1] ss:$0 sm:$0xff] }
   0x9   :  { %171 = vmatprep.subr.mxu0 %v200_v0  ;;  %v48_v22 = vmul.f32 %v144_v21, %v21_v5 }
   0xa   :  { %172 = vmatpush3.msra.mxu0 %v35_v7 }
   0xb   :  { %173 = vmatprep.subr.mxu0 %v200_v0  ;;  %49 = vadd.xlane.f32.xlu1 %v48_v22 }
   0xc   :  { %174 = vmatpush3.msra.mxu0 %v34_v9 }
   0xd   :  { %175 = vmatprep.subr.mxu0 %v200_v0 }
   0xe   :  { %176 = vmatpush3.msra.mxu0 %v33_v11 }
   0xf   :  { %177 = vmatprep.subr.mxu0 %v200_v0 }
  0x10   :  { %178 = vmatpush3.msra.mxu0 %v32_v12 }
  0x11   :  { %179 = vmatprep.subr.mxu0 %v200_v0 }
  0x12   :  { %180 = vmatpush3.msra.mxu0 %v31_v13 }
  0x13   :  { %181 = vmatprep.subr.mxu0 %v200_v0 }
  0x14   :  { %182 = vmatpush3.msra.mxu0 %v30_v14 }
  0x15   :  { %183 = vmatprep.subr.mxu0 %v200_v0 }
  0x16   :  { %184 = vmatpush3.msra.mxu0 %v29_v15 }
  0x17   :  { %185 = vmatprep.subr.mxu0 %v200_v0 }
  0x18   :  { %186 = vmatpush3.msra.mxu0 %v28_v16 }
  0x19   :  { %187 = vmatprep.subr.mxu0 %v200_v0 }
  0x1a   :  { %188 = vmatpush3.msra.mxu0 %v27_v17 }
  0x1b   :  { %189 = vmatprep.subr.mxu0 %v200_v0 }
  0x1c   :  { %190 = vmatpush3.msra.mxu0 %v26_v18 }
  0x1d   :  { %191 = vmatprep.subr.mxu0 %v200_v0 }
  0x1e   :  { %192 = vmatpush3.msra.mxu0 %v25_v19 }
  0x1f   :  { %193 = vmatprep.subr.mxu0 %v200_v0 }
  0x20   :  { %194 = vmatpush3.msra.mxu0 %v24_v20 }
  0x21   :  { %196 = vmatmul.mubr.f32.vlgmr.msra.gmra.mxu0 %v21_v5 }
  0x91   :  { %v61_v26 = vpop.xlane.xlu0 %60 }
  0x94   :  { %v50_v28 = vpop.xlane.xlu1 %49 }
  0x95   :  { %v52_v31 = vadd.f32 %v51_v27, %v50_v28 }
  0xe1   :  { %v128_v23 = vpop.f32.mrf.mxu0 }
  0xe2   :  { %v132_v24 = vmul.f32 %v128_v23, %v128_v23 }
  0xe3   :  { %v197_v25 = vpop.f32.mrf.mxu0 }
  0xe4   :  { %133 = vadd.xlane.f32.xlu0 %v132_v24 }
 0x16d   :  { %v134_v29 = vpop.xlane.xlu0 %133 }
 0x16e   :  { %v135_v30 = vsub.f32 %v61_v26, %v134_v29 }
 0x170   :  { %v136_v32 = vmul.f32 0.5, %v135_v30 }
 0x172   :  { %v137_v33 = vadd.f32 %v136_v32, %v52_v31 }
 0x174   :  { %139 = vst.msk [vmem:[%s300_s5] sm:$0xff] %vm138_vm1, %v137_v33 }

</bundles_post_ra>
